<compile_context>
chip_gen: v7x
topology: tpu7x:2x2x1
jax: 0.10.0
libtpu: 0.0.40
codegen_flags: <defaults>
</compile_context>

<pallas_src>
import functools

import numpy as np
import jax
import jax.numpy as jnp
from jax.experimental import pallas as pl
from jax.experimental.pallas import tpu as pltpu

DROP_P = 0.4
N_CLASSES = 10
H_PAD = 128          # hidden / output feature dims padded to one 128-lane vreg


def _round_up(x, m):
    return (x + m - 1) // m * m


def mlp_kernel(seed_ref,
               x_ref, w0_ref, b0_ref, w1_ref, b1_ref, w2_ref, b2_ref,
               o_ref, *, train):
    tile_b = x_ref.shape[0]

    # x streamed in its native dtype; cast to bf16 only here (saves a full
    # HBM pad+cast pass over x in the wrapper).
    x = x_ref[...].astype(jnp.bfloat16)

    # ---- fc0 + ReLU ---------------------------------------------------------
    h0 = jnp.dot(x, w0_ref[...], preferred_element_type=jnp.float32) + b0_ref[...]
    h0 = jnp.maximum(h0, 0.0)

    if train:
        # Stateless counter-based hash RNG keyed on (seed, layer, global row,
        # col).  Only Python/numpy scalar constants (literals) -- no captured
        # jax arrays.  iota / row-offset math is computed once and reused for
        # both dropout layers.
        # TODO(synk): RNG stream intentionally differs from PyTorch's dropout RNG.
        seed = seed_ref[0].astype(jnp.uint32)
        row0 = (pl.program_id(0) * tile_b).astype(jnp.uint32)
        rows = jax.lax.broadcasted_iota(jnp.int32, (tile_b, H_PAD), 0).astype(jnp.uint32)
        cols = jax.lax.broadcasted_iota(jnp.int32, (tile_b, H_PAD), 1).astype(jnp.uint32)
        base = (rows + row0) * np.uint32(0x9E3779B9) + cols * np.uint32(0x85EBCA77)
        base = base ^ (seed * np.uint32(0xC2B2AE3D))
        thresh = np.uint32(int(round(DROP_P * 2.0 ** 32)))   # P(keep) = 1 - p
        scale = 1.0 / (1.0 - DROP_P)

        def dropout(h, salt):
            v = base ^ np.uint32(salt)
            v = v ^ (v >> 16)
            v = v * np.uint32(0x7FEB352D)
            v = v ^ (v >> 15)
            v = v * np.uint32(0x846CA68B)
            v = v ^ (v >> 16)
            return jnp.where(v >= thresh, h * scale, 0.0)

        h0 = dropout(h0, 0x1B873593)

    # ---- fc1 + ReLU ---------------------------------------------------------
    h1 = jnp.dot(h0.astype(jnp.bfloat16), w1_ref[...],
                 preferred_element_type=jnp.float32) + b1_ref[...]
    h1 = jnp.maximum(h1, 0.0)
    if train:
        h1 = dropout(h1, 0x5BD1E995)

    # ---- fc2 + masked, numerically stable log_softmax over the 10 classes ---
    logits = jnp.dot(h1.astype(jnp.bfloat16), w2_ref[...],
                     preferred_element_type=jnp.float32) + b2_ref[...]
    col = jax.lax.broadcasted_iota(jnp.int32, logits.shape, 1)
    logits = jnp.where(col < N_CLASSES, logits, -1e30)       # kill padded lanes
    m = jnp.max(logits, axis=-1, keepdims=True)
    z = logits - m
    lse = jnp.log(jnp.sum(jnp.exp(z), axis=-1, keepdims=True))
    o_ref[...] = (z - lse).astype(o_ref.dtype)                # bf16, 128 lanes


def prepare_params(params):
    """Pad/cast weights ONCE (outside the jitted forward).

    Weights -> bf16 with feature dims padded to 128 lanes (padded rows/cols are
    zero, so padded activations stay exactly 0); biases -> f32 (1, 128).
    """
    w0, b0, w1, b1, w2, b2 = params

    def pad_w(w, rows, cols):
        w = jnp.asarray(w, jnp.float32)
        return jnp.pad(w, ((0, rows - w.shape[0]),
                           (0, cols - w.shape[1]))).astype(jnp.bfloat16)

    def pad_b(b, cols):
        b = jnp.asarray(b, jnp.float32).reshape(1, -1)
        return jnp.pad(b, ((0, 0), (0, cols - b.shape[1])))

    image_size = w0.shape[0]
    return (pad_w(w0, image_size, H_PAD), pad_b(b0, H_PAD),
            pad_w(w1, H_PAD, H_PAD),      pad_b(b1, H_PAD),
            pad_w(w2, H_PAD, H_PAD),      pad_b(b2, H_PAD))


@functools.partial(jax.jit, static_argnames=("image_size", "train"))
def model3_forward(x, padded_params, seed, *, image_size, train=True):
    w0p, b0p, w1p, b1p, w2p, b2p = padded_params

    xb = x.reshape(-1, image_size)        # x.view(-1, image_size); no pad, no cast
    batch = xb.shape[0]

    # Batch tile: as large as possible (<=1024 rows) while the double-buffered
    # x + out tiles stay within ~32 MiB of pipelined VMEM.  vmem limit of
    # 48 MiB is safe on v5e/v6e (128 MiB physical) and v7x (64 MiB physical).
    per_row = image_size * xb.dtype.itemsize + H_PAD * 2      # x row + bf16 out row
    cap = max(16, ((32 * 1024 * 1024) // (2 * per_row)) // 16 * 16)
    tile_b = min(1024, cap, _round_up(batch, 8))
    n_tiles = pl.cdiv(batch, tile_b)      # ragged last tile handled by Pallas masking
    b_out = n_tiles * tile_b              # tile-aligned output slab (no partial stores)

    tiled = lambda i, s: (i, 0)           # x / out: pipelined over batch tiles
    const = lambda i, s: (0, 0)           # weights / biases: VMEM-resident

    grid_spec = pltpu.PrefetchScalarGridSpec(
        num_scalar_prefetch=1,
        grid=(n_tiles,),
        in_specs=[
            pl.BlockSpec((tile_b, image_size), tiled),
            pl.BlockSpec((image_size, H_PAD), const),
            pl.BlockSpec((1, H_PAD), const),
            pl.BlockSpec((H_PAD, H_PAD), const),
            pl.BlockSpec((1, H_PAD), const),
            pl.BlockSpec((H_PAD, H_PAD), const),
            pl.BlockSpec((1, H_PAD), const),
        ],
        out_specs=pl.BlockSpec((tile_b, H_PAD), tiled),
    )

    out_pad = pl.pallas_call(
        functools.partial(mlp_kernel, train=train),
        out_shape=jax.ShapeDtypeStruct((b_out, H_PAD), jnp.bfloat16),
        grid_spec=grid_spec,
        compiler_params=pltpu.CompilerParams(
            dimension_semantics=("parallel",),
            vmem_limit_bytes=48 * 1024 * 1024,
        ),
    )(seed, xb, w0p, b0p, w1p, b1p, w2p, b2p)

    return out_pad[:batch, :N_CLASSES].astype(jnp.float32)


def init_params(key, image_size):
    """Mimic nn.Linear default init U(-1/sqrt(fan_in), 1/sqrt(fan_in))."""
    dims = [(image_size, 100), (100, 50), (50, 10)]
    params = []
    for fan_in, fan_out in dims:
        key, kw, kb = jax.random.split(key, 3)
        bound = float(1.0 / np.sqrt(fan_in))
        w = jax.random.uniform(kw, (fan_in, fan_out), jnp.float32, -bound, bound)
        b = jax.random.uniform(kb, (fan_out,), jnp.float32, -bound, bound)
        params += [w, b]
    return tuple(params)


if __name__ == "__main__":
    key = jax.random.PRNGKey(0)
    kx, kp = jax.random.split(key)

    # Small deterministic input: batch=2, 1 channel, 16x16 -> image_size=256
    x = jax.random.normal(kx, (2, 1, 16, 16), dtype=jnp.float32)
    image_size = 1 * 16 * 16

    params = init_params(kp, image_size)
    padded_params = prepare_params(params)      # pad/cast weights once, outside jit
    seed = jnp.array([0], dtype=jnp.int32)

    out = model3_forward(x, padded_params, seed, image_size=image_size)
    jax.block_until_ready(out)

    assert out.shape == (2, 10), out.shape
    # log_softmax rows should logsumexp to ~0 (loose tol: bf16 writeback)
    lse = jax.scipy.special.logsumexp(out, axis=1)
    assert jnp.allclose(lse, 0.0, atol=5e-2), lse
    print("KERNEL_OK")
</pallas_src>

<mosaic_0001>
module attributes {stable_mosaic.version = 11 : i64} {
  func.func @mlp_kernel(%arg0: i32, %arg1: memref<1xi32, #tpu.memory_space<smem>>, %arg2: memref<8x256xf32, #tpu.memory_space<vmem>>, %arg3: memref<256x128xbf16, #tpu.memory_space<vmem>>, %arg4: memref<1x128xf32, #tpu.memory_space<vmem>>, %arg5: memref<128x128xbf16, #tpu.memory_space<vmem>>, %arg6: memref<1x128xf32, #tpu.memory_space<vmem>>, %arg7: memref<128x128xbf16, #tpu.memory_space<vmem>>, %arg8: memref<1x128xf32, #tpu.memory_space<vmem>>, %arg9: memref<8x128xbf16, #tpu.memory_space<vmem>>) attributes {dimension_semantics = [#tpu.dimension_semantics<parallel>], iteration_bounds = array<i64: 1>, scalar_prefetch = 1 : i64, scratch_operands = 0 : i64, tpu.core_type = #tpu.core_type<tc>, window_params = [{transform_indices = @transform_0, window_bounds = array<i64: 8, 256>}, {pipeline_mode = #tpu.pipeline_mode<synchronous>, transform_indices = @transform_1, window_bounds = array<i64: 256, 128>}, {pipeline_mode = #tpu.pipeline_mode<synchronous>, transform_indices = @transform_2, window_bounds = array<i64: 1, 128>}, {pipeline_mode = #tpu.pipeline_mode<synchronous>, transform_indices = @transform_3, window_bounds = array<i64: 128, 128>}, {pipeline_mode = #tpu.pipeline_mode<synchronous>, transform_indices = @transform_4, window_bounds = array<i64: 1, 128>}, {pipeline_mode = #tpu.pipeline_mode<synchronous>, transform_indices = @transform_5, window_bounds = array<i64: 128, 128>}, {pipeline_mode = #tpu.pipeline_mode<synchronous>, transform_indices = @transform_6, window_bounds = array<i64: 1, 128>}, {transform_indices = @transform_7, window_bounds = array<i64: 8, 128>}]} {
    %c0 = arith.constant 0 : index
    %c0_0 = arith.constant 0 : index
    %0 = vector.load %arg2[%c0, %c0_0] : memref<8x256xf32, #tpu.memory_space<vmem>>, vector<8x256xf32>
    %1 = arith.truncf %0 : vector<8x256xf32> to vector<8x256xbf16>
    %c0_1 = arith.constant 0 : index
    %c0_2 = arith.constant 0 : index
    %2 = vector.load %arg3[%c0_1, %c0_2] : memref<256x128xbf16, #tpu.memory_space<vmem>>, vector<256x128xbf16>
    %cst = arith.constant dense<0.000000e+00> : vector<8x128xf32>
    %3 = tpu.matmul %1, %2, %cst {dimension_numbers = #tpu.dot_dimension_numbers<[1], [0], [0], [1], [0, 0, 1, 1], [], []>} : vector<8x256xbf16>, vector<256x128xbf16>, vector<8x128xf32> -> vector<8x128xf32>
    %c0_3 = arith.constant 0 : index
    %c0_4 = arith.constant 0 : index
    %4 = vector.load %arg4[%c0_3, %c0_4] : memref<1x128xf32, #tpu.memory_space<vmem>>, vector<1x128xf32>
    %5 = vector.broadcast %4 : vector<1x128xf32> to vector<8x128xf32>
    %6 = arith.addf %3, %5 : vector<8x128xf32>
    %cst_5 = arith.constant 0.000000e+00 : f32
    %7 = vector.broadcast %cst_5 : f32 to vector<8x128xf32>
    %8 = arith.maximumf %6, %7 : vector<8x128xf32>
    %c0_6 = arith.constant 0 : index
    %9 = memref.load %arg1[%c0_6] : memref<1xi32, #tpu.memory_space<smem>>
    %c8_i32 = arith.constant 8 : i32
    %10 = arith.muli %arg0, %c8_i32 : i32
    %11 = tpu.iota {dimensions = array<i32: 0>} : vector<8x128xi32>
    %12 = tpu.iota {dimensions = array<i32: 1>} : vector<8x128xi32>
    %13 = vector.broadcast %10 : i32 to vector<8x128xi32>
    %14 = arith.addi %11, %13 : vector<8x128xi32>
    %c-1640531527_i32 = arith.constant -1640531527 : i32
    %15 = vector.broadcast %c-1640531527_i32 : i32 to vector<8x128xi32>
    %16 = arith.muli %14, %15 : vector<8x128xi32>
    %c-2048144777_i32 = arith.constant -2048144777 : i32
    %17 = vector.broadcast %c-2048144777_i32 : i32 to vector<8x128xi32>
    %18 = arith.muli %12, %17 : vector<8x128xi32>
    %19 = arith.addi %16, %18 : vector<8x128xi32>
    %c-1028477379_i32 = arith.constant -1028477379 : i32
    %20 = arith.muli %9, %c-1028477379_i32 : i32
    %21 = vector.broadcast %20 : i32 to vector<8x128xi32>
    %22 = arith.xori %19, %21 : vector<8x128xi32>
    %c461845907_i32 = arith.constant 461845907 : i32
    %23 = vector.broadcast %c461845907_i32 : i32 to vector<8x128xi32>
    %24 = arith.xori %22, %23 : vector<8x128xi32>
    %c16_i32 = arith.constant 16 : i32
    %25 = vector.broadcast %c16_i32 : i32 to vector<8x128xi32>
    %26 = arith.shrui %24, %25 : vector<8x128xi32>
    %27 = arith.xori %24, %26 : vector<8x128xi32>
    %c2146121005_i32 = arith.constant 2146121005 : i32
    %28 = vector.broadcast %c2146121005_i32 : i32 to vector<8x128xi32>
    %29 = arith.muli %27, %28 : vector<8x128xi32>
    %c15_i32 = arith.constant 15 : i32
    %30 = vector.broadcast %c15_i32 : i32 to vector<8x128xi32>
    %31 = arith.shrui %29, %30 : vector<8x128xi32>
    %32 = arith.xori %29, %31 : vector<8x128xi32>
    %c-2073254261_i32 = arith.constant -2073254261 : i32
    %33 = vector.broadcast %c-2073254261_i32 : i32 to vector<8x128xi32>
    %34 = arith.muli %32, %33 : vector<8x128xi32>
    %c16_i32_7 = arith.constant 16 : i32
    %35 = vector.broadcast %c16_i32_7 : i32 to vector<8x128xi32>
    %36 = arith.shrui %34, %35 : vector<8x128xi32>
    %37 = arith.xori %34, %36 : vector<8x128xi32>
    %c1717986918_i32 = arith.constant 1717986918 : i32
    %38 = vector.broadcast %c1717986918_i32 : i32 to vector<8x128xi32>
    %39 = arith.cmpi uge, %37, %38 : vector<8x128xi32>
    %cst_8 = arith.constant 1.66666663 : f32
    %40 = vector.broadcast %cst_8 : f32 to vector<8x128xf32>
    %41 = arith.mulf %8, %40 : vector<8x128xf32>
    %cst_9 = arith.constant 0.000000e+00 : f32
    %42 = vector.broadcast %cst_9 : f32 to vector<8x128xf32>
    %43 = arith.select %39, %41, %42 : vector<8x128xi1>, vector<8x128xf32>
    %44 = arith.truncf %43 : vector<8x128xf32> to vector<8x128xbf16>
    %c0_10 = arith.constant 0 : index
    %c0_11 = arith.constant 0 : index
    %45 = vector.load %arg5[%c0_10, %c0_11] : memref<128x128xbf16, #tpu.memory_space<vmem>>, vector<128x128xbf16>
    %cst_12 = arith.constant dense<0.000000e+00> : vector<8x128xf32>
    %46 = tpu.matmul %44, %45, %cst_12 {dimension_numbers = #tpu.dot_dimension_numbers<[1], [0], [0], [1], [0, 0, 1, 1], [], []>} : vector<8x128xbf16>, vector<128x128xbf16>, vector<8x128xf32> -> vector<8x128xf32>
    %c0_13 = arith.constant 0 : index
    %c0_14 = arith.constant 0 : index
    %47 = vector.load %arg6[%c0_13, %c0_14] : memref<1x128xf32, #tpu.memory_space<vmem>>, vector<1x128xf32>
    %48 = vector.broadcast %47 : vector<1x128xf32> to vector<8x128xf32>
    %49 = arith.addf %46, %48 : vector<8x128xf32>
    %cst_15 = arith.constant 0.000000e+00 : f32
    %50 = vector.broadcast %cst_15 : f32 to vector<8x128xf32>
    %51 = arith.maximumf %49, %50 : vector<8x128xf32>
    %c1540483477_i32 = arith.constant 1540483477 : i32
    %52 = vector.broadcast %c1540483477_i32 : i32 to vector<8x128xi32>
    %53 = arith.xori %22, %52 : vector<8x128xi32>
    %c16_i32_16 = arith.constant 16 : i32
    %54 = vector.broadcast %c16_i32_16 : i32 to vector<8x128xi32>
    %55 = arith.shrui %53, %54 : vector<8x128xi32>
    %56 = arith.xori %53, %55 : vector<8x128xi32>
    %c2146121005_i32_17 = arith.constant 2146121005 : i32
    %57 = vector.broadcast %c2146121005_i32_17 : i32 to vector<8x128xi32>
    %58 = arith.muli %56, %57 : vector<8x128xi32>
    %c15_i32_18 = arith.constant 15 : i32
    %59 = vector.broadcast %c15_i32_18 : i32 to vector<8x128xi32>
    %60 = arith.shrui %58, %59 : vector<8x128xi32>
    %61 = arith.xori %58, %60 : vector<8x128xi32>
    %c-2073254261_i32_19 = arith.constant -2073254261 : i32
    %62 = vector.broadcast %c-2073254261_i32_19 : i32 to vector<8x128xi32>
    %63 = arith.muli %61, %62 : vector<8x128xi32>
    %c16_i32_20 = arith.constant 16 : i32
    %64 = vector.broadcast %c16_i32_20 : i32 to vector<8x128xi32>
    %65 = arith.shrui %63, %64 : vector<8x128xi32>
    %66 = arith.xori %63, %65 : vector<8x128xi32>
    %c1717986918_i32_21 = arith.constant 1717986918 : i32
    %67 = vector.broadcast %c1717986918_i32_21 : i32 to vector<8x128xi32>
    %68 = arith.cmpi uge, %66, %67 : vector<8x128xi32>
    %cst_22 = arith.constant 1.66666663 : f32
    %69 = vector.broadcast %cst_22 : f32 to vector<8x128xf32>
    %70 = arith.mulf %51, %69 : vector<8x128xf32>
    %cst_23 = arith.constant 0.000000e+00 : f32
    %71 = vector.broadcast %cst_23 : f32 to vector<8x128xf32>
    %72 = arith.select %68, %70, %71 : vector<8x128xi1>, vector<8x128xf32>
    %73 = arith.truncf %72 : vector<8x128xf32> to vector<8x128xbf16>
    %c0_24 = arith.constant 0 : index
    %c0_25 = arith.constant 0 : index
    %74 = vector.load %arg7[%c0_24, %c0_25] : memref<128x128xbf16, #tpu.memory_space<vmem>>, vector<128x128xbf16>
    %cst_26 = arith.constant dense<0.000000e+00> : vector<8x128xf32>
    %75 = tpu.matmul %73, %74, %cst_26 {dimension_numbers = #tpu.dot_dimension_numbers<[1], [0], [0], [1], [0, 0, 1, 1], [], []>} : vector<8x128xbf16>, vector<128x128xbf16>, vector<8x128xf32> -> vector<8x128xf32>
    %c0_27 = arith.constant 0 : index
    %c0_28 = arith.constant 0 : index
    %76 = vector.load %arg8[%c0_27, %c0_28] : memref<1x128xf32, #tpu.memory_space<vmem>>, vector<1x128xf32>
    %77 = vector.broadcast %76 : vector<1x128xf32> to vector<8x128xf32>
    %78 = arith.addf %75, %77 : vector<8x128xf32>
    %79 = tpu.iota {dimensions = array<i32: 1>} : vector<8x128xi32>
    %c10_i32 = arith.constant 10 : i32
    %80 = vector.broadcast %c10_i32 : i32 to vector<8x128xi32>
    %81 = arith.cmpi slt, %79, %80 : vector<8x128xi32>
    %cst_29 = arith.constant -1.000000e+30 : f32
    %82 = vector.broadcast %cst_29 : f32 to vector<8x128xf32>
    %83 = arith.select %81, %78, %82 : vector<8x128xi1>, vector<8x128xf32>
    %cst_30 = arith.constant dense<0xFF800000> : vector<8xf32>
    %84 = vector.multi_reduction <maximumf>, %83, %cst_30 [1] : vector<8x128xf32> to vector<8xf32>
    %85 = vector.shape_cast %84 : vector<8xf32> to vector<8x1xf32>
    %86 = vector.broadcast %85 : vector<8x1xf32> to vector<8x128xf32>
    %87 = arith.subf %83, %86 : vector<8x128xf32>
    %88 = math.exp %87 : vector<8x128xf32>
    %cst_31 = arith.constant dense<0.000000e+00> : vector<8xf32>
    %89 = vector.multi_reduction <add>, %88, %cst_31 [1] : vector<8x128xf32> to vector<8xf32>
    %90 = vector.shape_cast %89 : vector<8xf32> to vector<8x1xf32>
    %91 = math.log %90 : vector<8x1xf32>
    %92 = vector.broadcast %91 : vector<8x1xf32> to vector<8x128xf32>
    %93 = arith.subf %87, %92 : vector<8x128xf32>
    %94 = arith.truncf %93 : vector<8x128xf32> to vector<8x128xbf16>
    %c0_32 = arith.constant 0 : index
    %c0_33 = arith.constant 0 : index
    %95 = vector.load %arg9[%c0_32, %c0_33] : memref<8x128xbf16, #tpu.memory_space<vmem>>, vector<8x128xbf16>
    tpu.vector_store %arg9[%c0_32, %c0_33], %94 {strides = array<i32>} : memref<8x128xbf16, #tpu.memory_space<vmem>>, vector<8x128xbf16>,
    return
  }
  func.func @transform_0(%arg0: i32, %arg1: memref<1xi32, #tpu.memory_space<smem>>) -> (i32, i32) {
    %c0_i32 = arith.constant 0 : i32
    %c0_i32_0 = arith.constant 0 : i32
    return %arg0, %c0_i32 : i32, i32
  }
  func.func @transform_1(%arg0: i32, %arg1: memref<1xi32, #tpu.memory_space<smem>>) -> (i32, i32) {
    %c0_i32 = arith.constant 0 : i32
    %c0_i32_0 = arith.constant 0 : i32
    %c0_i32_1 = arith.constant 0 : i32
    return %c0_i32, %c0_i32_0 : i32, i32
  }
  func.func @transform_2(%arg0: i32, %arg1: memref<1xi32, #tpu.memory_space<smem>>) -> (i32, i32) {
    %c0_i32 = arith.constant 0 : i32
    %c0_i32_0 = arith.constant 0 : i32
    %c0_i32_1 = arith.constant 0 : i32
    return %c0_i32, %c0_i32_0 : i32, i32
  }
  func.func @transform_3(%arg0: i32, %arg1: memref<1xi32, #tpu.memory_space<smem>>) -> (i32, i32) {
    %c0_i32 = arith.constant 0 : i32
    %c0_i32_0 = arith.constant 0 : i32
    %c0_i32_1 = arith.constant 0 : i32
    return %c0_i32, %c0_i32_0 : i32, i32
  }
  func.func @transform_4(%arg0: i32, %arg1: memref<1xi32, #tpu.memory_space<smem>>) -> (i32, i32) {
    %c0_i32 = arith.constant 0 : i32
    %c0_i32_0 = arith.constant 0 : i32
    %c0_i32_1 = arith.constant 0 : i32
    return %c0_i32, %c0_i32_0 : i32, i32
  }
  func.func @transform_5(%arg0: i32, %arg1: memref<1xi32, #tpu.memory_space<smem>>) -> (i32, i32) {
    %c0_i32 = arith.constant 0 : i32
    %c0_i32_0 = arith.constant 0 : i32
    %c0_i32_1 = arith.constant 0 : i32
    return %c0_i32, %c0_i32_0 : i32, i32
  }
  func.func @transform_6(%arg0: i32, %arg1: memref<1xi32, #tpu.memory_space<smem>>) -> (i32, i32) {
    %c0_i32 = arith.constant 0 : i32
    %c0_i32_0 = arith.constant 0 : i32
    %c0_i32_1 = arith.constant 0 : i32
    return %c0_i32, %c0_i32_0 : i32, i32
  }
  func.func @transform_7(%arg0: i32, %arg1: memref<1xi32, #tpu.memory_space<smem>>) -> (i32, i32) {
    %c0_i32 = arith.constant 0 : i32
    %c0_i32_0 = arith.constant 0 : i32
    return %arg0, %c0_i32 : i32, i32
  }
}

</mosaic_0001>

<bundles_post_ra>
// kernel: model3_forward.1
= control target key start
LH: loop header
LB: loop body
LE: loop exit
PB: predicated region body
PF: predicated region fallthrough
CT: control target
= control target key end

     0   :  { %14 = vsyncpa [#allocation5], 0  ;;  %s950_s0 = inlined_call_operand.<no memory space> [shape: s32[1], index: 0, kind: input, shape index: {}]   ;;  %s951_s1 = inlined_call_operand.vmem [shape: f32[2,256], index: 1, kind: input, shape index: {}]   ;;  %s952_s2 = inlined_call_operand.hbm [shape: bf16[256,128], index: 2, kind: input, shape index: {}]   ;;  %s953_s3 = inlined_call_operand.vmem [shape: f32[1,128], index: 3, kind: input, shape index: {}]   ;;  %s954_s4 = inlined_call_operand.hbm [shape: bf16[128,128], index: 4, kind: input, shape index: {}]   ;;  %s955_s5 = inlined_call_operand.vmem [shape: f32[1,128], index: 5, kind: input, shape index: {}]   ;;  %s956_s6 = inlined_call_operand.hbm [shape: bf16[128,128], index: 6, kind: input, shape index: {}]   ;;  %s957_s7 = inlined_call_operand.vmem [shape: f32[1,128], index: 7, kind: input, shape index: {}]   ;;  %s958_s8 = inlined_call_operand.vmem [shape: bf16[8,128], index: 8, kind: output, shape index: {}]  }
   0x1   :  { %15 = vsyncpa [#allocation7], 0  ;;  %s798_s27 = smov [#allocation6]   ;;  %s799_s29 = smov [#allocation4]  }
   0x2   :  { %s37_s28 = sshll.u32 %s798_s27, 4  ;;  %s23_s30 = sshll.u32 %s799_s29, 4  ;;  %s38_s28 = int_to_ptr.vmem [resolvable:$true] %s37_s28  ;;  %s850_s30 = int_to_ptr.vmem [resolvable:$true] %s23_s30 }
   0x3   :  { %s728_s11 = scalar_lea.hbm %s954_s4, 1024 }
   0x4   :  { %p729_p0 = scmp.ne.s32.totalorder %s954_s4, %s728_s11  ;;  %p732_p1 = scmp.lt.u32.totalorder %s728_s11, %s954_s4 }
   0x6   :  { %p734_p2 = pnand %p732_p1, %p729_p0 }
   0x8   :  { %737 = shalt.err (!%p734_p2)
}
   0x9   :  { %s738_s16 = scalar_lea.vmem %s38_s28, 1024  ;;  %p743_p4 = scmp.lt.s32.totalorder %s38_s28, %s38_s28 }
   0xa   :  { %p739_p3 = scmp.ne.s32.totalorder %s38_s28, %s738_s16  ;;  %p744_p5 = scmp.lt.s32.totalorder %s738_s16, %s738_s16 }
   0xc   :  { %p745_p6 = por %p744_p5, %p743_p4 }
   0xe   :  { %p746_p7 = pnand %p745_p6, %p739_p3 }
  0x10   :  { %749 = shalt.err (!%p746_p7)
}
  0x11   :  { %s800_s17 = smov 64   ;;  %s801_s18 = smov 4  }
  0x12   :  { %43 = dma.hbm_to_vmem [thread:$0]  %s954_s4, 1024, %s38_s28, [#allocation7], %s800_s17, %s800_s17, %s801_s18  }
  0x13   :  { %s750_s23 = scalar_lea.hbm %s952_s2, 2048 }
  0x14   :  { %p751_p8 = scmp.ne.s32.totalorder %s952_s2, %s750_s23  ;;  %p754_p9 = scmp.lt.u32.totalorder %s750_s23, %s952_s2 }
  0x16   :  { %p756_p10 = pnand %p754_p9, %p751_p8 }
  0x18   :  { %759 = shalt.err (!%p756_p10)
}
  0x19   :  { %s760_s29 = scalar_lea.vmem %s850_s30, 2048  ;;  %p765_p12 = scmp.lt.s32.totalorder %s850_s30, %s850_s30 }
  0x1a   :  { %p761_p11 = scmp.ne.s32.totalorder %s850_s30, %s760_s29  ;;  %p766_p13 = scmp.lt.s32.totalorder %s760_s29, %s760_s29 }
  0x1c   :  { %p767_p0 = por %p766_p13, %p765_p12 }
  0x1e   :  { %p768_p1 = pnand %p767_p0, %p761_p11 }
  0x20   :  { %771 = shalt.err (!%p768_p1)
}
  0x21   :  { %29 = dma.hbm_to_vmem [thread:$0]  %s952_s2, 2048, %s850_s30, [#allocation5], %s800_s17, %s800_s17, %s801_s18  }
  0x22   :  { %s802_s9 = smov [#allocation8]   ;;  %s772_s13 = scalar_lea.hbm %s956_s6, 1024 }
  0x23   :  { %s51_s10 = sshll.u32 %s802_s9, 4  ;;  %p773_p2 = scmp.ne.s32.totalorder %s956_s6, %s772_s13  ;;  %s52_s10 = int_to_ptr.vmem [resolvable:$true] %s51_s10 }
  0x24   :  { %p776_p3 = scmp.lt.u32.totalorder %s772_s13, %s956_s6 }
  0x26   :  { %p778_p4 = pnand %p776_p3, %p773_p2 }
  0x28   :  { %781 = shalt.err (!%p778_p4)
}
  0x29   :  { %s782_s20 = scalar_lea.vmem %s52_s10, 1024  ;;  %p787_p6 = scmp.lt.s32.totalorder %s52_s10, %s52_s10 }
  0x2a   :  { %p783_p5 = scmp.ne.s32.totalorder %s52_s10, %s782_s20  ;;  %p788_p7 = scmp.lt.s32.totalorder %s782_s20, %s782_s20 }
  0x2c   :  { %p789_p8 = por %p788_p7, %p787_p6 }
  0x2e   :  { %p790_p9 = pnand %p789_p8, %p783_p5 }
  0x30   :  { %793 = shalt.err (!%p790_p9)
}
  0x31   :  { %57 = dma.hbm_to_vmem [thread:$0]  %s956_s6, 1024, %s52_s10, [#allocation7], %s800_s17, %s800_s17, %s801_s18  }
  0x32   :  { %794 = dma.done.wait [#allocation5], 2048  }
  0x33   :  { %795 = vsyncadd [#allocation5], 4294965248 }
  0x34   :  { %796 = dma.done.wait [#allocation7], 2048  }
  0x35   :  { %797 = vsyncadd [#allocation7], 4294965248  ;;  %v803_v0 = vmov 0.0   ;;  %v688_v1 = vld [vmem:[#allocation4 + $0x40] sm:$0xff]   ;;  %v690_v3 = vld [vmem:[#allocation4 + $0x48] sm:$0xff]   ;;  %v83_v7 = vlaneseq  ;;  %vm804_vm0 = vmmov 0  }
  0x36   :  { %640 = vmatprep.subr.bf16.mxu1 %v803_v0  ;;  %v689_v2 = vld [vmem:[#allocation4] sm:$0xff]   ;;  %600 = vmatprep.subr.bf16.mxu0 %v688_v1  ;;  %v691_v4 = vld [vmem:[#allocation4 + $0x8] sm:$0xff]   ;;  %v692_v5 = vld [vmem:[#allocation4 + $0x50] sm:$0xff]   ;;  %s287_s23 = smul.u32 3266489917, %s950_s0 }
  0x37   :  { %601 = vmatpush3.bf16.msra.mxu0 %v689_v2  ;;  %v693_v6 = vld [vmem:[#allocation4 + $0x10] sm:$0xff]   ;;  %v694_v8 = vld [vmem:[#allocation4 + $0x58] sm:$0xff]   ;;  %v904_v10 = vshrl.u32 %v83_v7, 7  ;;  %v696_v11 = vld [vmem:[#allocation4 + $0x60] sm:$0xff]   ;;  %656 = vmatprep.mubr.msk.bf16.mxu1 %vm804_vm0, %v803_v0  ;;  %v929_v39 = vand.u32 127, %v83_v7 }
  0x38   :  { %602 = vmatprep.subr.bf16.mxu0 %v690_v3  ;;  %v695_v9 = vld [vmem:[#allocation4 + $0x18] sm:$0xff]   ;;  %v697_v12 = vld [vmem:[#allocation4 + $0x20] sm:$0xff]   ;;  %v698_v13 = vld [vmem:[#allocation4 + $0x68] sm:$0xff]   ;;  %v288_v43 = vstv %s287_s23 }
  0x39   :  { %v699_v14 = vld [vmem:[#allocation4 + $0x28] sm:$0xff]   ;;  %v726_v15 = vld.sshfl [vmem:[%s951_s1] sm:$0xff pattern:$0x76325410]  ;;  %v700_v18 = vld [vmem:[#allocation4 + $0x70] sm:$0xff]   ;;  %vm539_vm5 = vcmp.lt.s32.totalorder %v929_v39, 10 }
  0x3a   :  { %v727_v16 = vld.sshfl [vmem:[%s951_s1 + $0x8] sm:$0xff pattern:$0x76325410]  ;;  %v706_v17 = vld [vmem:[#allocation6] sm:$0xff]   ;;  %v701_v20 = vld [vmem:[#allocation4 + $0x30] sm:$0xff]  }
  0x3b   :  { %603 = vmatpush3.bf16.msra.mxu0 %v691_v4  ;;  %641 = vmatpush3.bf16.msra.mxu1 %v706_v17  ;;  %v707_v19 = vld [vmem:[#allocation6 + $0x8] sm:$0xff]   ;;  %v95_v21 = vcombine.high %v726_v15, %v727_v16  ;;  %v702_v22 = vld [vmem:[#allocation4 + $0x78] sm:$0xff]   ;;  %v708_v23 = vld [vmem:[#allocation6 + $0x10] sm:$0xff]   ;;  %v94_v26 = vcombine.low %v726_v15, %v727_v16  ;;  %v284_v40 = vmul.u32 2654435769, %v904_v10 }
  0x3c   :  { %604 = vmatprep.subr.bf16.mxu0 %v692_v5  ;;  %642 = vmatprep.subr.bf16.mxu1 %v803_v0  ;;  %v703_v25 = vld [vmem:[#allocation4 + $0x38] sm:$0xff]   ;;  %v710_v29 = vld [vmem:[#allocation6 + $0x20] sm:$0xff]   ;;  %v711_v30 = vld [vmem:[#allocation6 + $0x28] sm:$0xff]   ;;  %v285_v41 = vmul.u32 2246822519, %v929_v39 }
  0x3d   :  { %v99_v24 = vpack.c.bf16 %v95_v21, %v95_v21  ;;  %v709_v27 = vld [vmem:[#allocation6 + $0x18] sm:$0xff]   ;;  %v98_v28 = vpack.c.bf16 %v94_v26, %v94_v26  ;;  %v712_v31 = vld [vmem:[#allocation6 + $0x30] sm:$0xff]   ;;  %v714_v33 = vld [vmem:[#allocation8] sm:$0xff]  }
  0x3e   :  { %v713_v32 = vld [vmem:[#allocation6 + $0x38] sm:$0xff]   ;;  %v715_v34 = vld [vmem:[#allocation8 + $0x8] sm:$0xff]   ;;  %v716_v35 = vld [vmem:[#allocation8 + $0x10] sm:$0xff]   ;;  %v286_v42 = vadd.s32 %v285_v41, %v284_v40 }
  0x3f   :  { %605 = vmatpush3.bf16.msra.mxu0 %v693_v6  ;;  %643 = vmatpush3.bf16.msra.mxu1 %v707_v19  ;;  %v717_v36 = vld [vmem:[#allocation8 + $0x18] sm:$0xff]   ;;  %v718_v37 = vld [vmem:[#allocation8 + $0x20] sm:$0xff]   ;;  %v719_v38 = vld [vmem:[#allocation8 + $0x28] sm:$0xff]  }
  0x40   :  { %606 = vmatprep.subr.bf16.mxu0 %v694_v8  ;;  %267 = vmatprep.mubr.bf16.mxu0 %v99_v24  ;;  %v289_v44 = vxor.u32 %v288_v43, %v286_v42  ;;  %v559_v54 = vld [vmem:[%s953_s3] ss:$0 sm:$0xff]  ;;  %v720_v1 = vld [vmem:[#allocation8 + $0x30] sm:$0xff]   ;;  %v721_v2 = vld [vmem:[#allocation8 + $0x38] sm:$0xff]  }
  0x41   :  { %644 = vmatprep.subr.bf16.mxu1 %v803_v0 }
  0x42   :  { %v290_v45 = vxor.u32 461845907, %v289_v44  ;;  %v415_v3 = vxor.u32 1540483477, %v289_v44 }
  0x43   :  { %607 = vmatpush3.bf16.msra.mxu0 %v695_v9  ;;  %645 = vmatpush3.bf16.msra.mxu1 %v708_v23 }
  0x44   :  { %608 = vmatprep.subr.bf16.mxu0 %v696_v11  ;;  %646 = vmatprep.subr.bf16.mxu1 %v803_v0  ;;  %v291_v46 = vshrl.u32 %v290_v45, 16  ;;  %v416_v4 = vshrl.u32 %v415_v3, 16  ;;  %v576_v11 = vld [vmem:[%s955_s5] ss:$0 sm:$0xff] }
  0x46   :  { %v292_v47 = vxor.u32 %v291_v46, %v290_v45  ;;  %v417_v5 = vxor.u32 %v416_v4, %v415_v3 }
  0x47   :  { %609 = vmatpush3.bf16.msra.mxu0 %v697_v12  ;;  %647 = vmatpush3.bf16.msra.mxu1 %v709_v27 }
  0x48   :  { %610 = vmatprep.subr.bf16.mxu0 %v698_v13  ;;  %648 = vmatprep.subr.bf16.mxu1 %v803_v0  ;;  %v293_v48 = vmul.u32 2146121005, %v292_v47  ;;  %v418_v6 = vmul.u32 2146121005, %v417_v5 }
  0x4a   :  { %v294_v49 = vshrl.u32 %v293_v48, 15  ;;  %v419_v7 = vshrl.u32 %v418_v6, 15 }
  0x4b   :  { %611 = vmatpush3.bf16.msra.mxu0 %v699_v14  ;;  %649 = vmatpush3.bf16.msra.mxu1 %v710_v29 }
  0x4c   :  { %612 = vmatprep.subr.bf16.mxu0 %v700_v18  ;;  %650 = vmatprep.subr.bf16.mxu1 %v803_v0  ;;  %v295_v50 = vxor.u32 %v294_v49, %v293_v48  ;;  %v420_v8 = vxor.u32 %v419_v7, %v418_v6 }
  0x4e   :  { %v296_v51 = vmul.u32 2221713035, %v295_v50  ;;  %v421_v9 = vmul.u32 2221713035, %v420_v8 }
  0x4f   :  { %613 = vmatpush3.bf16.msra.mxu0 %v701_v20  ;;  %651 = vmatpush3.bf16.msra.mxu1 %v711_v30  ;;  %v588_v20 = vld [vmem:[%s957_s7] ss:$0 sm:$0xff] }
  0x50   :  { %614 = vmatprep.subr.bf16.mxu0 %v702_v22  ;;  %652 = vmatprep.subr.bf16.mxu1 %v803_v0  ;;  %v297_v52 = vshrl.u32 %v296_v51, 16  ;;  %v422_v10 = vshrl.u32 %v421_v9, 16 }
  0x52   :  { %v298_v58 = vxor.u32 %v297_v52, %v296_v51  ;;  %v423_v12 = vxor.u32 %v422_v10, %v421_v9 }
  0x53   :  { %615 = vmatpush3.bf16.msra.mxu0 %v703_v25  ;;  %653 = vmatpush3.bf16.msra.mxu1 %v712_v31 }
  0x54   :  { %660 = vmatprep.subr.bf16.mxu0 %v803_v0  ;;  %654 = vmatprep.subr.bf16.mxu1 %v803_v0  ;;  %vm299_vm1 = vcmp.ge.u32.totalorder %v298_v58, 1717986918  ;;  %vm424_vm3 = vcmp.ge.u32.totalorder %v423_v12, 1717986918 }
  0x55   :  { %vm585_vm2 = vmpackc.low %vm299_vm1, %vm299_vm1 }
  0x56   :  { %268 = vmatmul.mubr.bf16.vlgmr.msra.gmra.mrb[0].mxu0 %v98_v28  ;;  %vm597_vm4 = vmpackc.low %vm424_vm3, %vm424_vm3 }
  0x57   :  { %655 = vmatpush3.bf16.msra.mxu1 %v713_v32  ;;  %676 = vmatprep.mubr.msk.bf16.mxu0 %vm804_vm0, %v803_v0 }
  0x58   :  { %661 = vmatpush3.bf16.msra.mxu0 %v714_v33 }
  0x59   :  { %662 = vmatprep.subr.bf16.mxu0 %v803_v0 }
  0x5c   :  { %663 = vmatpush3.bf16.msra.mxu0 %v715_v34 }
  0x5d   :  { %664 = vmatprep.subr.bf16.mxu0 %v803_v0 }
  0x60   :  { %665 = vmatpush3.bf16.msra.mxu0 %v716_v35 }
  0x61   :  { %666 = vmatprep.subr.bf16.mxu0 %v803_v0 }
  0x64   :  { %667 = vmatpush3.bf16.msra.mxu0 %v717_v36 }
  0x65   :  { %668 = vmatprep.subr.bf16.mxu0 %v803_v0 }
  0x68   :  { %669 = vmatpush3.bf16.msra.mxu0 %v718_v37 }
  0x69   :  { %670 = vmatprep.subr.bf16.mxu0 %v803_v0 }
  0x6c   :  { %671 = vmatpush3.bf16.msra.mxu0 %v719_v38 }
  0x6d   :  { %672 = vmatprep.subr.bf16.mxu0 %v803_v0 }
  0x70   :  { %673 = vmatpush3.bf16.msra.mxu0 %v720_v1 }
  0x71   :  { %674 = vmatprep.subr.bf16.mxu0 %v803_v0 }
  0x74   :  { %675 = vmatpush3.bf16.msra.mxu0 %v721_v2 }
 0x129   :  { %v616_v53 = vpop.f32.mrb[0].mxu0 }
 0x12a   :  { %v617_v55 = vpop.f32.mrb[1].mxu0 }
 0x12b   :  { %v618_v56 = vadd.f32 %v617_v55, %v616_v53  ;;  %v619_v57 = vpop.f32.mrb[2].mxu0 }
 0x12c   :  { %v620_v59 = vpop.f32.mrb[3].mxu0 }
 0x12d   :  { %v270_v60 = vadd.f32 %v618_v56, %v559_v54 }
 0x12f   :  { %v275_v61 = vmax.f32 %v270_v60, 0.0 }
 0x131   :  { %v300_v62 = vmul.f32 1.6666666, %v275_v61 }
 0x133   :  { %v586_v63 = vpack.c.bf16 %v300_v62, %v300_v62 }
 0x135   :  { %657 = vmatmul.mubr.msk.bf16.vlgmr.msra.gmra.mrb[0].mxu1 %vm585_vm2, %v586_v63 }
 0x208   :  { %v408_v13 = vpop.f32.mrb[0].mxu1 }
 0x209   :  { %v409_v14 = vadd.f32 %v576_v11, %v408_v13  ;;  %v658_v15 = vpop.f32.mrb[1].mxu1 }
 0x20a   :  { %v411_v16 = vpop.f32.mrb[2].mxu1 }
 0x20b   :  { %v414_v0 = vmax.f32 %v409_v14, 0.0  ;;  %v659_v17 = vpop.f32.mrb[3].mxu1 }
 0x20d   :  { %v425_v18 = vmul.f32 1.6666666, %v414_v0 }
 0x20f   :  { %v598_v19 = vpack.c.bf16 %v425_v18, %v425_v18 }
 0x211   :  { %677 = vmatmul.mubr.msk.bf16.vlgmr.msra.gmra.mrb[4].mxu0 %vm597_vm4, %v598_v19 }
 0x2e4   :  { %v533_v21 = vpop.f32.mrb[4].mxu0 }
 0x2e5   :  { %v534_v22 = vadd.f32 %v588_v20, %v533_v21  ;;  %v678_v23 = vpop.f32.mrb[5].mxu0 }
 0x2e6   :  { %v536_v24 = vpop.f32.mrb[6].mxu0 }
 0x2e7   :  { %v679_v25 = vpop.f32.mrb[7].mxu0  ;;  %v540_v26 = vsel %vm539_vm5, %v534_v22, -1e+30 }
 0x2e8   :  { %541 = vmax.xlane.f32.xlu0 %v540_v26 }
 0x375   :  { %v542_v27 = vpop.xlane.xlu0 %541 }
 0x376   :  { %v543_v28 = vsub.f32 %v540_v26, %v542_v27 }
 0x378   :  { %v544_v29 = vmul.f32 1.442695, %v543_v28 }
 0x37a   :  { %722 = vpow2.f32 %v544_v29 }
 0x384   :  { %v723_v30 = vpop.eup %722 }
 0x385   :  { %546 = vadd.xlane.f32.xlu0 %v723_v30 }
 0x412   :  { %v547_v31 = vpop.xlane.xlu0 %546 }
 0x413   :  { %724 = vlog2.f32 %v547_v31 }
 0x41d   :  { %v725_v32 = vpop.eup %724 }
 0x41e   :  { %v549_v33 = vmul.f32 0.6931472, %v725_v32 }
 0x420   :  { %v550_v34 = vsub.f32 %v543_v28, %v549_v33 }
 0x422   :  { %v551_v35 = vpack.c.bf16 %v550_v34, %v550_v34 }
 0x424   :  { %552 = vst [vmem:[%s958_s8] sm:$0xf] %v551_v35 }
 0x425   :  { %557 = vsyncpa [#allocation5], 1 }
 0x426   :  { %558 = vsyncpa [#allocation7], 1 }

</bundles_post_ra>
